<compile_context>
chip_gen: v7x
topology: tpu7x:2x2x1
jax: 0.10.0
libtpu: 0.0.40
codegen_flags: <defaults>
</compile_context>

<pallas_src>
import jax
import jax.numpy as jnp
from jax.experimental import pallas as pl
from jax.experimental.pallas import tpu as pltpu


def decoder_kernel(z_ref, w1_ref, b1_ref, w2_ref, b2_ref, o_ref):
    # First linear: (TM, latent) @ (latent, hidden) + (1, hidden), then ReLU.
    h = jnp.dot(z_ref[...], w1_ref[...], preferred_element_type=jnp.float32)
    h = jnp.maximum(h + b1_ref[...], 0.0)
    # Second linear: (TM, hidden) @ (hidden, input_dims) + (1, input_dims).
    y = jnp.dot(h, w2_ref[...], preferred_element_type=jnp.float32)
    y = y + b2_ref[...]
    # Logistic lowers to the EUP transcendental path (free under the store/DMA
    # bottleneck); lane-dense 256-wide store.
    o_ref[...] = jax.nn.sigmoid(y).astype(o_ref.dtype)


def _choose_tm(B, tm_max=4096):
    """Pick the batch tile TM.

    - multiple of 8 sublanes (or == B for tiny batches),
    - capped at tm_max (VMEM budget ~19 MiB at 4096, under the 32 MiB default),
    - when >1 tile is needed, use an EVEN number of ~equal tiles so the
      'parallel' batch axis balances across both v7x TensorCores.
    """
    tm_max = max(8, (tm_max // 8) * 8)
    if B <= 8:
        return B                      # single block spanning the full batch dim
    n_tiles = max(2, pl.cdiv(B, tm_max))
    if n_tiles % 2:
        n_tiles += 1                  # even tile count -> balanced megacore split
    tm = ((pl.cdiv(B, n_tiles) + 7) // 8) * 8
    return min(tm, tm_max)


def decoder_forward(z, w1, b1, w2, b2, h, w, tm_max=4096, out_dtype=jnp.float32):
    """z: (B, latent_dims). Weights stored already transposed:
       w1: (latent_dims, hidden_dims), b1: (1, hidden_dims)
       w2: (hidden_dims, input_dims),  b2: (1, input_dims)
       Returns (B, 1, h, w) in out_dtype (float32 matches the PyTorch module;
       bf16 halves the dominant HBM writeback if the consumer allows it)."""
    B, latent_dims = z.shape
    hidden_dims = w1.shape[1]
    input_dims = w2.shape[1]
    assert input_dims == h * w, "input_dims must equal h*w for the final reshape"

    TM = _choose_tm(B, tm_max)
    grid = (pl.cdiv(B, TM),)

    const_map = lambda i: (0, 0)      # weights/biases VMEM-resident across tiles

    f32 = jnp.dtype(jnp.float32).itemsize
    out_b = jnp.dtype(out_dtype).itemsize
    cost = pl.CostEstimate(
        flops=2 * B * (latent_dims * hidden_dims + hidden_dims * input_dims),
        transcendentals=B * input_dims,
        bytes_accessed=(B * latent_dims * f32                     # z in
                        + B * input_dims * out_b                  # out write
                        + (latent_dims * hidden_dims + hidden_dims
                           + hidden_dims * input_dims + input_dims) * f32),
    )

    out2d = pl.pallas_call(
        decoder_kernel,
        out_shape=jax.ShapeDtypeStruct((B, input_dims), out_dtype),
        grid=grid,
        in_specs=[
            # Batch-tiled activation input (double-buffered by the pipeline).
            pl.BlockSpec((TM, latent_dims), lambda i: (i, 0)),
            # Weights / biases: constant index_map -> fetched once, VMEM-resident.
            pl.BlockSpec((latent_dims, hidden_dims), const_map),
            pl.BlockSpec((1, hidden_dims), const_map),
            pl.BlockSpec((hidden_dims, input_dims), const_map),
            pl.BlockSpec((1, input_dims), const_map),
        ],
        out_specs=pl.BlockSpec((TM, input_dims), lambda i: (i, 0)),
        compiler_params=pltpu.CompilerParams(
            # Batch tiles are independent -> megacore-shardable on v7x.
            # No vmem_limit_bytes override: 32 MiB scoped default >1.5x the
            # worst-case working set and is safe on v7x (64 MiB physical).
            dimension_semantics=("parallel",),
        ),
        cost_estimate=cost,
    )(z, w1, b1, w2, b2)

    # Glue: reshape to NCHW (B, 1, h, w) exactly as PyTorch does.  Kept outside
    # the kernel so the hot-path stores stay lane-dense (256 lanes).
    return out2d.reshape((-1, 1, h, w))


def init_params(key, latent_dims, hidden_dims, input_dims):
    """Deterministic synthetic init (PyTorch Linear-like uniform bounds)."""
    k1, k2, k3, k4 = jax.random.split(key, 4)
    bound1 = 1.0 / (latent_dims ** 0.5)
    bound2 = 1.0 / (hidden_dims ** 0.5)
    # Stored transposed relative to PyTorch (out, in) -> here (in, out).
    w1 = jax.random.uniform(k1, (latent_dims, hidden_dims), jnp.float32,
                            -bound1, bound1)
    b1 = jax.random.uniform(k2, (1, hidden_dims), jnp.float32, -bound1, bound1)
    w2 = jax.random.uniform(k3, (hidden_dims, input_dims), jnp.float32,
                            -bound2, bound2)
    b2 = jax.random.uniform(k4, (1, input_dims), jnp.float32, -bound2, bound2)
    return w1, b1, w2, b2


def _reference(z, w1, b1, w2, b2, h, w):
    return jax.nn.sigmoid(
        jnp.maximum(z @ w1 + b1, 0.0) @ w2 + b2
    ).reshape((-1, 1, h, w))


if __name__ == "__main__":
    latent_dims = 8
    hidden_dims = 32
    h, w = 16, 16
    input_dims = h * w  # 256

    key = jax.random.PRNGKey(0)
    kz, kp, kz2 = jax.random.split(key, 3)
    w1, b1, w2, b2 = init_params(kp, latent_dims, hidden_dims, input_dims)

    # Case 1: tiny batch (single block, TM == B == 2).
    B = 2
    z = jax.random.normal(kz, (B, latent_dims), jnp.float32)
    out = jax.block_until_ready(decoder_forward(z, w1, b1, w2, b2, h, w))
    ref = _reference(z, w1, b1, w2, b2, h, w)
    assert out.shape == (B, 1, h, w)
    assert jnp.allclose(out, ref, atol=1e-5, rtol=1e-5)

    # Case 2: larger batch exercising the tiled grid with a balanced, even
    # (megacore-friendly) split: B=1040 -> 2 tiles of 520 rows.
    B2 = 1040
    z2 = jax.random.normal(kz2, (B2, latent_dims), jnp.float32)
    out2 = jax.block_until_ready(decoder_forward(z2, w1, b1, w2, b2, h, w))
    ref2 = _reference(z2, w1, b1, w2, b2, h, w)
    assert out2.shape == (B2, 1, h, w)
    assert jnp.allclose(out2, ref2, atol=1e-5, rtol=1e-5)

    print("KERNEL_OK")
</pallas_src>

<mosaic_0001>
module attributes {stable_mosaic.version = 11 : i64} {
  func.func @decoder_kernel(%arg0: i32, %arg1: memref<2x8xf32, #tpu.memory_space<vmem>>, %arg2: memref<8x32xf32, #tpu.memory_space<vmem>>, %arg3: memref<1x32xf32, #tpu.memory_space<vmem>>, %arg4: memref<32x256xf32, #tpu.memory_space<vmem>>, %arg5: memref<1x256xf32, #tpu.memory_space<vmem>>, %arg6: memref<2x256xf32, #tpu.memory_space<vmem>>) attributes {dimension_semantics = [#tpu.dimension_semantics<parallel>], iteration_bounds = array<i64: 1>, scalar_prefetch = 0 : i64, scratch_operands = 0 : i64, tpu.core_type = #tpu.core_type<tc>, window_params = [{transform_indices = @transform_0, window_bounds = array<i64: 2, 8>}, {pipeline_mode = #tpu.pipeline_mode<synchronous>, transform_indices = @transform_1, window_bounds = array<i64: 8, 32>}, {pipeline_mode = #tpu.pipeline_mode<synchronous>, transform_indices = @transform_2, window_bounds = array<i64: 1, 32>}, {pipeline_mode = #tpu.pipeline_mode<synchronous>, transform_indices = @transform_3, window_bounds = array<i64: 32, 256>}, {pipeline_mode = #tpu.pipeline_mode<synchronous>, transform_indices = @transform_4, window_bounds = array<i64: 1, 256>}, {transform_indices = @transform_5, window_bounds = array<i64: 2, 256>}]} {
    %c0 = arith.constant 0 : index
    %c0_0 = arith.constant 0 : index
    %0 = vector.load %arg1[%c0, %c0_0] : memref<2x8xf32, #tpu.memory_space<vmem>>, vector<2x8xf32>
    %c0_1 = arith.constant 0 : index
    %c0_2 = arith.constant 0 : index
    %1 = vector.load %arg2[%c0_1, %c0_2] : memref<8x32xf32, #tpu.memory_space<vmem>>, vector<8x32xf32>
    %cst = arith.constant dense<0.000000e+00> : vector<2x32xf32>
    %2 = tpu.matmul %0, %1, %cst {dimension_numbers = #tpu.dot_dimension_numbers<[1], [0], [0], [1], [0, 0, 1, 1], [], []>} : vector<2x8xf32>, vector<8x32xf32>, vector<2x32xf32> -> vector<2x32xf32>
    %c0_3 = arith.constant 0 : index
    %c0_4 = arith.constant 0 : index
    %3 = vector.load %arg3[%c0_3, %c0_4] : memref<1x32xf32, #tpu.memory_space<vmem>>, vector<1x32xf32>
    %4 = vector.broadcast %3 : vector<1x32xf32> to vector<2x32xf32>
    %5 = arith.addf %2, %4 : vector<2x32xf32>
    %cst_5 = arith.constant 0.000000e+00 : f32
    %6 = vector.broadcast %cst_5 : f32 to vector<2x32xf32>
    %7 = arith.maximumf %5, %6 : vector<2x32xf32>
    %c0_6 = arith.constant 0 : index
    %c0_7 = arith.constant 0 : index
    %8 = vector.load %arg4[%c0_6, %c0_7] : memref<32x256xf32, #tpu.memory_space<vmem>>, vector<32x256xf32>
    %cst_8 = arith.constant dense<0.000000e+00> : vector<2x256xf32>
    %9 = tpu.matmul %7, %8, %cst_8 {dimension_numbers = #tpu.dot_dimension_numbers<[1], [0], [0], [1], [0, 0, 1, 1], [], []>} : vector<2x32xf32>, vector<32x256xf32>, vector<2x256xf32> -> vector<2x256xf32>
    %c0_9 = arith.constant 0 : index
    %c0_10 = arith.constant 0 : index
    %10 = vector.load %arg5[%c0_9, %c0_10] : memref<1x256xf32, #tpu.memory_space<vmem>>, vector<1x256xf32>
    %11 = vector.broadcast %10 : vector<1x256xf32> to vector<2x256xf32>
    %12 = arith.addf %9, %11 : vector<2x256xf32>
    %13 = arith.negf %12 : vector<2x256xf32>
    %14 = math.exp %13 : vector<2x256xf32>
    %cst_11 = arith.constant 1.000000e+00 : f32
    %15 = vector.broadcast %cst_11 : f32 to vector<2x256xf32>
    %16 = arith.addf %15, %14 : vector<2x256xf32>
    %17 = arith.divf %15, %16 : vector<2x256xf32>
    %c0_12 = arith.constant 0 : index
    %c0_13 = arith.constant 0 : index
    %18 = vector.load %arg6[%c0_12, %c0_13] : memref<2x256xf32, #tpu.memory_space<vmem>>, vector<2x256xf32>
    tpu.vector_store %arg6[%c0_12, %c0_13], %17 {strides = array<i32>} : memref<2x256xf32, #tpu.memory_space<vmem>>, vector<2x256xf32>,
    return
  }
  func.func @transform_0(%arg0: i32) -> (i32, i32) {
    %c0_i32 = arith.constant 0 : i32
    %c0_i32_0 = arith.constant 0 : i32
    return %arg0, %c0_i32 : i32, i32
  }
  func.func @transform_1(%arg0: i32) -> (i32, i32) {
    %c0_i32 = arith.constant 0 : i32
    %c0_i32_0 = arith.constant 0 : i32
    %c0_i32_1 = arith.constant 0 : i32
    return %c0_i32, %c0_i32_0 : i32, i32
  }
  func.func @transform_2(%arg0: i32) -> (i32, i32) {
    %c0_i32 = arith.constant 0 : i32
    %c0_i32_0 = arith.constant 0 : i32
    %c0_i32_1 = arith.constant 0 : i32
    return %c0_i32, %c0_i32_0 : i32, i32
  }
  func.func @transform_3(%arg0: i32) -> (i32, i32) {
    %c0_i32 = arith.constant 0 : i32
    %c0_i32_0 = arith.constant 0 : i32
    %c0_i32_1 = arith.constant 0 : i32
    return %c0_i32, %c0_i32_0 : i32, i32
  }
  func.func @transform_4(%arg0: i32) -> (i32, i32) {
    %c0_i32 = arith.constant 0 : i32
    %c0_i32_0 = arith.constant 0 : i32
    %c0_i32_1 = arith.constant 0 : i32
    return %c0_i32, %c0_i32_0 : i32, i32
  }
  func.func @transform_5(%arg0: i32) -> (i32, i32) {
    %c0_i32 = arith.constant 0 : i32
    %c0_i32_0 = arith.constant 0 : i32
    return %arg0, %c0_i32 : i32, i32
  }
}

</mosaic_0001>

<bundles_post_ra>
// kernel: tpu_custom_call.1
= control target key start
LH: loop header
LB: loop body
LE: loop exit
PB: predicated region body
PF: predicated region fallthrough
CT: control target
= control target key end

     0   :  { %10 = vsyncpa [#allocation3], 0  ;;  %s500_s0 = inlined_call_operand.hbm [shape: f32[2,8], index: 0, kind: input, shape index: {}]   ;;  %s501_s1 = inlined_call_operand.hbm [shape: f32[8,32], index: 1, kind: input, shape index: {}]   ;;  %s502_s2 = inlined_call_operand.vmem [shape: f32[1,32], index: 2, kind: input, shape index: {}]   ;;  %s503_s3 = inlined_call_operand.hbm [shape: f32[32,256], index: 3, kind: input, shape index: {}]   ;;  %s504_s4 = inlined_call_operand.vmem [shape: f32[1,256], index: 4, kind: input, shape index: {}]   ;;  %s505_s5 = inlined_call_operand.hbm [shape: f32[2,256], index: 5, kind: output, shape index: {}]  }
   0x1   :  { %11 = vsyncpa [#allocation6], 0 }
   0x2   :  { %12 = vsyncpa [#allocation4], 0  ;;  %s408_s18 = smov [#allocation5]   ;;  %s409_s20 = smov [#allocation2]  }
   0x3   :  { %s29_s19 = sshll.u32 %s408_s18, 4  ;;  %s19_s21 = sshll.u32 %s409_s20, 4  ;;  %s30_s19 = int_to_ptr.vmem [resolvable:$true] %s29_s19  ;;  %s20_s21 = int_to_ptr.vmem [resolvable:$true] %s19_s21 }
   0x4   :  { %s314_s24 = scalar_lea.hbm %s501_s1, 128 }
   0x5   :  { %p315_p0 = scmp.ne.s32.totalorder %s501_s1, %s314_s24  ;;  %p318_p1 = scmp.lt.u32.totalorder %s314_s24, %s501_s1 }
   0x7   :  { %p320_p2 = pnand %p318_p1, %p315_p0 }
   0x9   :  { %323 = shalt.err (!%p320_p2)
}
   0xa   :  { %s324_s29 = scalar_lea.vmem %s30_s19, 128  ;;  %p329_p4 = scmp.lt.s32.totalorder %s30_s19, %s30_s19 }
   0xb   :  { %p325_p3 = scmp.ne.s32.totalorder %s30_s19, %s324_s29  ;;  %p330_p5 = scmp.lt.s32.totalorder %s324_s29, %s324_s29 }
   0xd   :  { %p331_p6 = por %p330_p5, %p329_p4 }
   0xf   :  { %p332_p7 = pnand %p331_p6, %p325_p3 }
  0x11   :  { %335 = shalt.err (!%p332_p7)
}
  0x12   :  { %32 = dma.hbm_to_vmem [thread:$0]  %s501_s1, 128, %s30_s19, [#allocation6]  }
  0x13   :  { %s336_s9 = scalar_lea.hbm %s500_s0, 32 }
  0x14   :  { %p337_p8 = scmp.ne.s32.totalorder %s500_s0, %s336_s9  ;;  %p340_p9 = scmp.lt.u32.totalorder %s336_s9, %s500_s0 }
  0x16   :  { %p342_p10 = pnand %p340_p9, %p337_p8 }
  0x18   :  { %345 = shalt.err (!%p342_p10)
}
  0x19   :  { %s346_s14 = scalar_lea.vmem %s20_s21, 32  ;;  %p351_p12 = scmp.lt.s32.totalorder %s20_s21, %s20_s21 }
  0x1a   :  { %p347_p11 = scmp.ne.s32.totalorder %s20_s21, %s346_s14  ;;  %p352_p13 = scmp.lt.s32.totalorder %s346_s14, %s346_s14 }
  0x1c   :  { %p353_p0 = por %p352_p13, %p351_p12 }
  0x1e   :  { %p354_p1 = pnand %p353_p0, %p347_p11 }
  0x20   :  { %357 = shalt.err (!%p354_p1)
}
  0x21   :  { %22 = dma.hbm_to_vmem [thread:$0]  %s500_s0, 32, %s20_s21, [#allocation3]  }
  0x22   :  { %s410_s16 = smov [#allocation7]   ;;  %s358_s20 = scalar_lea.hbm %s503_s3, 1024 }
  0x23   :  { %s40_s17 = sshll.u32 %s410_s16, 4  ;;  %p359_p2 = scmp.ne.s32.totalorder %s503_s3, %s358_s20  ;;  %s41_s17 = int_to_ptr.vmem [resolvable:$true] %s40_s17 }
  0x24   :  { %p362_p3 = scmp.lt.u32.totalorder %s358_s20, %s503_s3 }
  0x26   :  { %p364_p4 = pnand %p362_p3, %p359_p2 }
  0x28   :  { %367 = shalt.err (!%p364_p4)
}
  0x29   :  { %s368_s26 = scalar_lea.vmem %s41_s17, 1024  ;;  %p373_p6 = scmp.lt.s32.totalorder %s41_s17, %s41_s17 }
  0x2a   :  { %p369_p5 = scmp.ne.s32.totalorder %s41_s17, %s368_s26  ;;  %p374_p7 = scmp.lt.s32.totalorder %s368_s26, %s368_s26 }
  0x2c   :  { %p375_p8 = por %p374_p7, %p373_p6 }
  0x2e   :  { %p376_p9 = pnand %p375_p8, %p369_p5 }
  0x30   :  { %379 = shalt.err (!%p376_p9)
}
  0x31   :  { %s411_s0 = smov 256   ;;  %s412_s21 = smov 16  }
  0x32   :  { %46 = dma.hbm_to_vmem [thread:$0]  %s503_s3, 1024, %s41_s17, [#allocation6], %s411_s0, %s411_s0, %s412_s21  }
  0x33   :  { %402 = dma.done.wait [#allocation3], 32  }
  0x34   :  { %403 = vsyncadd [#allocation3], 4294967264 }
  0x35   :  { %404 = dma.done.wait [#allocation6], 1152  }
  0x36   :  { %405 = vsyncadd [#allocation6], 4294966144  ;;  %v413_v0 = vmov 0.0   ;;  %vm414_vm0 = vmmov 0   ;;  %vm67_vm1 = vcmask 64512   ;;  %v59_v1 = vld [vmem:[#allocation5] sm:$0xff]  ;;  %v152_v20 = vlaneseq }
  0x37   :  { %285 = vmatprep.subr.mxu0 %v413_v0  ;;  %287 = vmatprep.mubr.msk.f32.mxu0 %vm414_vm0, %v413_v0  ;;  %v58_v2 = vld [vmem:[#allocation2] sm:$0x3]  ;;  %v143_v3 = vld [vmem:[#allocation7 + $0x8] sm:$0xff]  ;;  %v145_v4 = vld [vmem:[#allocation7 + $0x18] sm:$0xff]  ;;  %vm162_vm2 = vcmask 261120  }
  0x38   :  { %230 = vmatprep.mubr.f32.mxu1 %v413_v0  ;;  %286 = vmatpush3.msra.mxu0 %v59_v1  ;;  %v142_v5 = vld [vmem:[#allocation7] sm:$0xff]  ;;  %v144_v6 = vld [vmem:[#allocation7 + $0x10] sm:$0xff]  ;;  %v290_v7 = vpack.c.bf16 %v145_v4, %v143_v3  ;;  %v147_v9 = vld [vmem:[#allocation7 + $0x28] sm:$0xff]  ;;  %v153_v21 = vshrl.u32 %v152_v20, 7 }
  0x39   :  { %288 = vmatmul.mubr.msk.f32.vlgmr.msra.gmra.mrb[0].mxu0 %vm67_vm1, %v58_v2  ;;  %v292_v8 = vpack.c.bf16 %v144_v6, %v142_v5  ;;  %v149_v10 = vld [vmem:[#allocation7 + $0x38] sm:$0xff]  ;;  %v146_v12 = vld [vmem:[#allocation7 + $0x20] sm:$0xff]  ;;  %v148_v13 = vld [vmem:[#allocation7 + $0x30] sm:$0xff] }
  0x3a   :  { %291 = vmatprep.subr.bf16.mxu1 %v290_v7  ;;  %v294_v11 = vpack.c.bf16 %v149_v10, %v147_v9  ;;  %v296_v14 = vpack.c.bf16 %v148_v13, %v146_v12  ;;  %v277_v15 = vld [vmem:[%s502_s2] ss:$0 sm:$0xff]  ;;  %v154_v22 = vsub.s32 0, %v153_v21  ;;  %v158_v24 = vsub.s32 1, %v153_v21  ;;  %s415_s2 = smov [#allocation8]  }
  0x3b   :  { %293 = vmatpush1.bf16.msra.mxu1 %v292_v8  ;;  %v150_v23 = vld [vmem:[%s504_s4] sm:$0x3]  ;;  %s267_s7 = sshll.u32 %s415_s2, 4  ;;  %s268_s7 = int_to_ptr.vmem [resolvable:$true] %s267_s7 }
  0x3c   :  { %295 = vmatprep.subr.bf16.mxu1 %v294_v11  ;;  %v155_v25 = vrot.slane %v150_v23, %v154_v22  ;;  %v159_v26 = vrot.slane %v150_v23, %v158_v24  ;;  %s380_s4 = scalar_lea.vmem %s268_s7, 64  ;;  %p385_p11 = scmp.lt.s32.totalorder %s268_s7, %s268_s7 }
  0x3d   :  { %p381_p10 = scmp.ne.s32.totalorder %s268_s7, %s380_s4  ;;  %p386_p12 = scmp.lt.s32.totalorder %s380_s4, %s380_s4 }
  0x3f   :  { %297 = vmatpush1.bf16.msra.mxu1 %v296_v14  ;;  %p387_p13 = por %p386_p12, %p385_p11 }
  0x41   :  { %p388_p0 = pnand %p387_p13, %p381_p10 }
 0x10c   :  { %v137_v16 = vpop.f32.mrb[0].mxu0 }
 0x10d   :  { %v138_v17 = vadd.f32 %v277_v15, %v137_v16  ;;  %v289_v18 = vpop.f32.mrb[1].mxu0 }
 0x10f   :  { %v141_v19 = vmax.f32 %v138_v17, 0.0 }
 0x111   :  { %279 = vmatmul.mubr.msk.f32.vlgmr.msra.gmra.mrb[0].mxu1 %vm162_vm2, %v141_v19 }
 0x1e4   :  { %v232_v27 = vpop.f32.mrb[0].mxu1 }
 0x1e5   :  { %v233_v28 = vadd.f32 %v232_v27, %v155_v25  ;;  %v234_v29 = vpop.f32.mrb[1].mxu1 }
 0x1e6   :  { %v235_v30 = vadd.f32 %v234_v29, %v159_v26 }
 0x1e7   :  { %v280_v31 = vmul.f32 -1.442695, %v233_v28 }
 0x1e8   :  { %v281_v32 = vmul.f32 -1.442695, %v235_v30 }
 0x1e9   :  { %306 = vpow2.f32 %v280_v31 }
 0x1ea   :  { %308 = vpow2.f32 %v281_v32 }
 0x1f3   :  { %v307_v33 = vpop.eup %306 }
 0x1f4   :  { %v309_v34 = vpop.eup %308  ;;  %v243_v35 = vadd.f32 1.0, %v307_v33 }
 0x1f5   :  { %v244_v36 = vadd.f32 1.0, %v309_v34 }
 0x1f6   :  { %310 = vrcp.f32 %v243_v35 }
 0x1f7   :  { %312 = vrcp.f32 %v244_v36 }
 0x200   :  { %v311_v37 = vpop.eup %310 }
 0x201   :  { %v313_v38 = vpop.eup %312 }
 0x202   :  { %v251_v39 = vcombine.low %v311_v37, %v313_v38 }
 0x204   :  { %282 = vst.sshfl [vmem:[#allocation8] sm:$0x33 pattern:$0x76325410] %v251_v39 }
 0x205   :  { %391 = shalt.err (!%p388_p0)
}
 0x206   :  { %s392_s10 = scalar_lea.hbm %s505_s5, 64 }
 0x207   :  { %p393_p1 = scmp.ne.s32.totalorder %s505_s5, %s392_s10  ;;  %p396_p2 = scmp.lt.u32.totalorder %s392_s10, %s505_s5 }
 0x209   :  { %p398_p3 = pnand %p396_p2, %p393_p1 }
 0x20b   :  { %401 = shalt.err (!%p398_p3)
}
 0x20c   :  { %270 = dma.vmem_to_hbm [thread:$0]  %s268_s7, 64, %s505_s5, [#allocation4]  }
 0x20d   :  { %406 = dma.done.wait [#allocation4], 64  }
 0x20e   :  { %407 = vsyncadd [#allocation4], 4294967232 }
 0x20f   :  { %274 = vsyncpa [#allocation3], 1 }
 0x210   :  { %275 = vsyncpa [#allocation6], 1 }
 0x211   :  { %276 = vsyncpa [#allocation4], 1 }

</bundles_post_ra>
